<compile_context>
chip_gen: v7x
topology: tpu7x:2x2x1
jax: 0.10.0
libtpu: 0.0.40
codegen_flags: <defaults>
</compile_context>

<pallas_src>
import jax
import jax.numpy as jnp
import numpy as np
from jax import lax
from jax.experimental import pallas as pl
from jax.experimental.pallas import tpu as pltpu

HDIM = 32          # hdim of the TreeLSTM (PyTorch default 100; small for demo)
NUM_CLASSES = 5
VOCAB = 50


def _round_up(x, m):
  return (x + m - 1) // m * m


def treelstm_kernel(
    lids_ref, rids_ref,      # (n_levels, L_pad, 1) int32 child ids, -1 = pad
    nids_ref,                # (n_levels, L_pad)    int32 node  ids, -1 = pad
    e_ref,                   # (N_pad, H)   leaf embeddings per node row
    wl_ref, bl_ref,          # (H, 3H), (1, 3H)   leaf gates [Wi|Wo|Wu]
    wb_ref, bb_ref,          # (4H, 5H), (1, 5H)  fused internal gates
    state_ref):              # (N_pad, 2H)  packed [h | c] per node (output)
  H = wl_ref.shape[0]
  N_pad = state_ref.shape[0]
  n_levels, L_pad = nids_ref.shape

  # ---- all leaves in one batched matmul -----------------------------------
  # (internal-node rows get overwritten at their level before any parent
  #  reads them; pad rows are never read.)
  z = jnp.dot(e_ref[...], wl_ref[...],
              preferred_element_type=jnp.float32) + bl_ref[...]
  i0 = jax.nn.sigmoid(z[:, 0:H])
  o0 = jax.nn.sigmoid(z[:, H:2 * H])
  u0 = jnp.maximum(z[:, 2 * H:3 * H], 0.0)
  c0 = i0 * u0
  h0 = o0 * jnp.maximum(c0, 0.0)
  state_ref[...] = jnp.concatenate([h0, c0], axis=1)

  # ---- one MXU-vectorized step per tree level -----------------------------
  def level_body(lvl, carry):
    l_ids = lids_ref[lvl]                       # (L_pad, 1) int32
    r_ids = rids_ref[lvl]                       # (L_pad, 1) int32
    n_ids = nids_ref[pl.ds(lvl, 1), :]          # (1, L_pad) int32

    state = state_ref[...]                      # (N_pad, 2H) packed [h|c]

    # One-hot child selections (pad ids == -1 never match any node index).
    lane_nodes = lax.broadcasted_iota(jnp.int32, (L_pad, N_pad), 1)
    sel_l = (lane_nodes == l_ids).astype(jnp.float32)     # (L_pad, N_pad)
    sel_r = (lane_nodes == r_ids).astype(jnp.float32)

    gl = jnp.dot(sel_l, state, preferred_element_type=jnp.float32)  # [lh|lc]
    gr = jnp.dot(sel_r, state, preferred_element_type=jnp.float32)  # [rh|rc]
    g = jnp.concatenate([gl, gr], axis=1)                 # (L_pad, 4H) lanes

    # Fused gates: z columns = [Ui e | Uo e | Uu e | Uf1 lh | Uf2 rh] (+bias).
    zz = jnp.dot(g, wb_ref[...],
                 preferred_element_type=jnp.float32) + bb_ref[...]
    ig = jax.nn.sigmoid(zz[:, 0:H])
    og = jax.nn.sigmoid(zz[:, H:2 * H])
    ug = jnp.maximum(zz[:, 2 * H:3 * H], 0.0)
    f1 = jax.nn.sigmoid(zz[:, 3 * H:4 * H])
    f2 = jax.nn.sigmoid(zz[:, 4 * H:5 * H])
    lc = g[:, H:2 * H]
    rc = g[:, 3 * H:4 * H]
    c_new = ig * ug + f1 * lc + f2 * rc
    h_new = og * jnp.maximum(c_new, 0.0)
    new_state = jnp.concatenate([h_new, c_new], axis=1)   # (L_pad, 2H)

    # Scatter: one-hot node placement on the MXU + row-mask select.
    sub_nodes = lax.broadcasted_iota(jnp.int32, (N_pad, L_pad), 0)
    sel_n = (sub_nodes == n_ids).astype(jnp.float32)      # (N_pad, L_pad)
    scattered = jnp.dot(sel_n, new_state,
                        preferred_element_type=jnp.float32)  # (N_pad, 2H)
    updated = jnp.max(sel_n, axis=1, keepdims=True)          # (N_pad, 1)
    state_ref[...] = jnp.where(updated > 0.0, scattered, state)
    return carry

  lax.fori_loop(0, n_levels, level_body, 0)


def linearize_levels(is_leaf, left, right):
  """Group internal nodes of a post-order (possibly merged) tree by level.

  Returns (node_ids, left_ids, right_ids), each (n_levels, L_pad) int32 with
  -1 padding; -1 never matches any node in the kernel's one-hot selections,
  so no per-level counts are needed.
  """
  is_leaf = np.asarray(is_leaf)
  left = np.asarray(left)
  right = np.asarray(right)
  N = int(is_leaf.shape[0])
  level = np.zeros(N, np.int64)
  for n in range(N):                 # post-order: children precede parents
    if not is_leaf[n]:
      level[n] = 1 + max(level[left[n]], level[right[n]])
  D = int(level.max()) if N else 0
  per_level = [[n for n in range(N) if (not is_leaf[n]) and level[n] == l]
               for l in range(1, D + 1)]
  width = max([len(v) for v in per_level] + [1])
  L_pad = _round_up(width, 8)
  rows = max(D, 1)
  node_ids = np.full((rows, L_pad), -1, np.int32)
  left_ids = np.full((rows, L_pad), -1, np.int32)
  right_ids = np.full((rows, L_pad), -1, np.int32)
  for l, nodes in enumerate(per_level):
    for j, n in enumerate(nodes):
      node_ids[l, j] = n
      left_ids[l, j] = left[n]
      right_ids[l, j] = right[n]
  return node_ids, left_ids, right_ids


def tree_lstm_forward_merged(is_leaf, word, left, right, params):
  """Forward over one (possibly multi-tree merged) post-order node table.

  Returns per-node class logits (N, C) in post-order (= traverse() order).
  """
  emb, wl, bl, un, bn, uf1, bf1, uf2, bf2, pw, pb = params
  is_leaf = np.asarray(is_leaf)
  word = np.asarray(word)
  left = np.asarray(left)
  right = np.asarray(right)
  N = int(is_leaf.shape[0])
  H = int(emb.shape[1])

  node_ids, left_ids, right_ids = linearize_levels(is_leaf, left, right)
  n_levels, L_pad = node_ids.shape
  N_pad = _round_up(N, 8)

  # Leaf embeddings for every node row (embedding table never enters VMEM;
  # internal/pad rows are overwritten / never read).
  e = jnp.zeros((N_pad, H), jnp.float32).at[:N].set(jnp.asarray(emb)[word])

  # Fused internal weights over the packed gathered layout [lh|lc|rh|rc]:
  # columns = [Ui | Uo | Uu | Uf1 | Uf2]; lc/rc rows are zero (they only feed
  # the elementwise cell update).
  zH = jnp.zeros((H, H), jnp.float32)
  z5H = jnp.zeros((H, 5 * H), jnp.float32)
  w_lh = jnp.concatenate([un[:H], uf1, zH], axis=1)       # (H, 5H)
  w_rh = jnp.concatenate([un[H:], zH, uf2], axis=1)       # (H, 5H)
  wb = jnp.concatenate([w_lh, z5H, w_rh, z5H], axis=0)    # (4H, 5H)
  bb = jnp.concatenate([bn, bf1, bf2], axis=1)            # (1, 5H)

  inputs = (
      jnp.asarray(left_ids).reshape(n_levels, L_pad, 1),   # child ids, column
      jnp.asarray(right_ids).reshape(n_levels, L_pad, 1),  # child ids, column
      jnp.asarray(node_ids),                               # node ids, row
      e, wl, bl, wb, bb,
  )

  def full_spec(a):
    nd = a.ndim
    return pl.BlockSpec(a.shape, lambda i, *_, _nd=nd: (0,) * _nd)

  grid_spec = pltpu.PrefetchScalarGridSpec(
      num_scalar_prefetch=0,
      grid=(1,),                       # single step; level loop is in-kernel
      in_specs=[full_spec(a) for a in inputs],
      out_specs=pl.BlockSpec((N_pad, 2 * H), lambda i, *_: (0, 0)),
  )
  state = pl.pallas_call(
      treelstm_kernel,
      out_shape=jax.ShapeDtypeStruct((N_pad, 2 * H), jnp.float32),
      grid_spec=grid_spec,
      compiler_params=pltpu.CompilerParams(
          dimension_semantics=("arbitrary",)),
  )(*inputs)

  # Tiny per-node classifier stays in XLA: avoids keeping a 128-lane-padded
  # logits table resident in VMEM; the kernel's only output is packed [h|c].
  return state[:N, :H] @ pw + pb


def tree_lstm_forward_batch(trees, params):
  """Batch several trees into ONE pallas_call by merging their level tables."""
  sizes = [int(np.asarray(t[0]).shape[0]) for t in trees]
  offsets = np.cumsum([0] + sizes[:-1])
  is_leaf = np.concatenate([np.asarray(t[0]) for t in trees])
  word = np.concatenate([np.asarray(t[1]) for t in trees])
  left = np.concatenate([np.asarray(t[2]) + o for t, o in zip(trees, offsets)])
  right = np.concatenate([np.asarray(t[3]) + o for t, o in zip(trees, offsets)])
  logits = tree_lstm_forward_merged(is_leaf, word, left, right, params)
  return [logits[int(o):int(o) + s] for o, s in zip(offsets, sizes)]


def ref_forward(is_leaf, word, left, right, params):
  """Pure-numpy reference mirroring TreeLSTM.traverse over the linearized tree."""
  emb, wl, bl, un, bn, uf1, bf1, uf2, bf2, pw, pb = [np.asarray(p) for p in params]
  N = is_leaf.shape[0]
  H = emb.shape[1]
  sig = lambda x: 1.0 / (1.0 + np.exp(-x))
  relu = lambda x: np.maximum(x, 0.0)
  hs = np.zeros((N, H), np.float32)
  cs = np.zeros((N, H), np.float32)
  probs = []
  for n in range(N):
    if is_leaf[n]:
      e = emb[word[n]:word[n] + 1]
      z = e @ wl + bl
      ig, og, ug = sig(z[:, :H]), sig(z[:, H:2 * H]), relu(z[:, 2 * H:])
      c = ig * ug
    else:
      lh = hs[left[n]:left[n] + 1]
      rh = hs[right[n]:right[n] + 1]
      lc = cs[left[n]:left[n] + 1]
      rc = cs[right[n]:right[n] + 1]
      z = lh @ un[:H] + rh @ un[H:] + bn
      ig, og, ug = sig(z[:, :H]), sig(z[:, H:2 * H]), relu(z[:, 2 * H:])
      f1 = sig(lh @ uf1 + bf1)
      f2 = sig(rh @ uf2 + bf2)
      c = ig * ug + f1 * lc + f2 * rc
    h = og * relu(c)
    hs[n] = h
    cs[n] = c
    probs.append(h @ pw + pb)
  return np.concatenate(probs, axis=0).astype(np.float32)


if __name__ == "__main__":
  key = jax.random.PRNGKey(0)
  ks = jax.random.split(key, 11)
  H, C, V = HDIM, NUM_CLASSES, VOCAB

  def init(k, shape, scale=0.1):
    return scale * jax.random.normal(k, shape, dtype=jnp.float32)

  emb = init(ks[0], (V, H))
  wl  = init(ks[1], (H, 3 * H));      bl  = init(ks[2], (1, 3 * H))   # Wi|Wo|Wu
  un  = init(ks[3], (2 * H, 3 * H));  bn  = init(ks[4], (1, 3 * H))   # Ui|Uo|Uu
  uf1 = init(ks[5], (H, H));          bf1 = init(ks[6], (1, H))
  uf2 = init(ks[7], (H, H));          bf2 = init(ks[8], (1, H))
  pw  = init(ks[9], (H, C));          pb  = init(ks[10], (1, C))
  params = (emb, wl, bl, un, bn, uf1, bf1, uf2, bf2, pw, pb)

  # Tree A: ((w3 w7) (w11 w19)) in traverse() post-order:
  #   0: leaf w3, 1: leaf w7, 2: node(0,1), 3: leaf w11, 4: leaf w19,
  #   5: node(3,4), 6: node(2,5)  (root)
  tree_a = (np.array([1, 1, 0, 1, 1, 0, 0], np.int32),     # is_leaf
            np.array([3, 7, 0, 11, 19, 0, 0], np.int32),   # word
            np.array([0, 0, 0, 0, 0, 3, 2], np.int32),     # left child
            np.array([0, 0, 1, 0, 0, 4, 5], np.int32))     # right child
  # Tree B: (((w1 w2) w4) w6) -- left-skewed, depth 3:
  #   0: leaf w1, 1: leaf w2, 2: node(0,1), 3: leaf w4, 4: node(2,3),
  #   5: leaf w6, 6: node(4,5)  (root)
  tree_b = (np.array([1, 1, 0, 1, 0, 1, 0], np.int32),
            np.array([1, 2, 0, 4, 0, 6, 0], np.int32),
            np.array([0, 0, 0, 0, 2, 0, 4], np.int32),
            np.array([0, 0, 1, 0, 3, 0, 5], np.int32))

  outs = tree_lstm_forward_batch([tree_a, tree_b], params)
  outs = jax.block_until_ready(outs)

  for tree, out in zip((tree_a, tree_b), outs):
    ref = ref_forward(*tree, params)
    assert out.shape == ref.shape, (out.shape, ref.shape)
    err = np.max(np.abs(np.asarray(out) - ref))
    assert np.allclose(np.asarray(out), ref, atol=2e-3, rtol=2e-3), err
  print("KERNEL_OK")
</pallas_src>

<mosaic_0001>
module attributes {stable_mosaic.version = 11 : i64} {
  func.func @treelstm_kernel(%arg0: i32, %arg1: memref<3x8x1xi32, #tpu.memory_space<vmem>>, %arg2: memref<3x8x1xi32, #tpu.memory_space<vmem>>, %arg3: memref<3x8xi32, #tpu.memory_space<vmem>>, %arg4: memref<16x32xf32, #tpu.memory_space<vmem>>, %arg5: memref<32x96xf32, #tpu.memory_space<vmem>>, %arg6: memref<1x96xf32, #tpu.memory_space<vmem>>, %arg7: memref<128x160xf32, #tpu.memory_space<vmem>>, %arg8: memref<1x160xf32, #tpu.memory_space<vmem>>, %arg9: memref<16x64xf32, #tpu.memory_space<vmem>>) attributes {dimension_semantics = [#tpu.dimension_semantics<arbitrary>], iteration_bounds = array<i64: 1>, scalar_prefetch = 0 : i64, scratch_operands = 0 : i64, tpu.core_type = #tpu.core_type<tc>, window_params = [{pipeline_mode = #tpu.pipeline_mode<synchronous>, transform_indices = @transform_0, window_bounds = array<i64: 3, 8, 1>}, {pipeline_mode = #tpu.pipeline_mode<synchronous>, transform_indices = @transform_1, window_bounds = array<i64: 3, 8, 1>}, {pipeline_mode = #tpu.pipeline_mode<synchronous>, transform_indices = @transform_2, window_bounds = array<i64: 3, 8>}, {pipeline_mode = #tpu.pipeline_mode<synchronous>, transform_indices = @transform_3, window_bounds = array<i64: 16, 32>}, {pipeline_mode = #tpu.pipeline_mode<synchronous>, transform_indices = @transform_4, window_bounds = array<i64: 32, 96>}, {pipeline_mode = #tpu.pipeline_mode<synchronous>, transform_indices = @transform_5, window_bounds = array<i64: 1, 96>}, {pipeline_mode = #tpu.pipeline_mode<synchronous>, transform_indices = @transform_6, window_bounds = array<i64: 128, 160>}, {pipeline_mode = #tpu.pipeline_mode<synchronous>, transform_indices = @transform_7, window_bounds = array<i64: 1, 160>}, {pipeline_mode = #tpu.pipeline_mode<synchronous>, transform_indices = @transform_8, window_bounds = array<i64: 16, 64>}]} {
    %c0 = arith.constant 0 : index
    %c0_0 = arith.constant 0 : index
    %0 = vector.load %arg4[%c0, %c0_0] : memref<16x32xf32, #tpu.memory_space<vmem>>, vector<16x32xf32>
    %c0_1 = arith.constant 0 : index
    %c0_2 = arith.constant 0 : index
    %1 = vector.load %arg5[%c0_1, %c0_2] : memref<32x96xf32, #tpu.memory_space<vmem>>, vector<32x96xf32>
    %cst = arith.constant dense<0.000000e+00> : vector<16x96xf32>
    %2 = tpu.matmul %0, %1, %cst {dimension_numbers = #tpu.dot_dimension_numbers<[1], [0], [0], [1], [0, 0, 1, 1], [], []>} : vector<16x32xf32>, vector<32x96xf32>, vector<16x96xf32> -> vector<16x96xf32>
    %c0_3 = arith.constant 0 : index
    %c0_4 = arith.constant 0 : index
    %3 = vector.load %arg6[%c0_3, %c0_4] : memref<1x96xf32, #tpu.memory_space<vmem>>, vector<1x96xf32>
    %4 = vector.broadcast %3 : vector<1x96xf32> to vector<16x96xf32>
    %5 = arith.addf %2, %4 : vector<16x96xf32>
    %6 = vector.extract_strided_slice %5 {offsets = [0, 0], sizes = [16, 32], strides = [1, 1]} : vector<16x96xf32> to vector<16x32xf32>
    %7 = arith.negf %6 : vector<16x32xf32>
    %8 = math.exp %7 : vector<16x32xf32>
    %cst_5 = arith.constant 1.000000e+00 : f32
    %9 = vector.broadcast %cst_5 : f32 to vector<16x32xf32>
    %10 = arith.addf %9, %8 : vector<16x32xf32>
    %11 = arith.divf %9, %10 : vector<16x32xf32>
    %12 = vector.extract_strided_slice %5 {offsets = [0, 32], sizes = [16, 32], strides = [1, 1]} : vector<16x96xf32> to vector<16x32xf32>
    %13 = arith.negf %12 : vector<16x32xf32>
    %14 = math.exp %13 : vector<16x32xf32>
    %cst_6 = arith.constant 1.000000e+00 : f32
    %15 = vector.broadcast %cst_6 : f32 to vector<16x32xf32>
    %16 = arith.addf %15, %14 : vector<16x32xf32>
    %17 = arith.divf %15, %16 : vector<16x32xf32>
    %18 = vector.extract_strided_slice %5 {offsets = [0, 64], sizes = [16, 32], strides = [1, 1]} : vector<16x96xf32> to vector<16x32xf32>
    %cst_7 = arith.constant 0.000000e+00 : f32
    %19 = vector.broadcast %cst_7 : f32 to vector<16x32xf32>
    %20 = arith.maximumf %18, %19 : vector<16x32xf32>
    %21 = arith.mulf %11, %20 : vector<16x32xf32>
    %cst_8 = arith.constant 0.000000e+00 : f32
    %22 = vector.broadcast %cst_8 : f32 to vector<16x32xf32>
    %23 = arith.maximumf %21, %22 : vector<16x32xf32>
    %24 = arith.mulf %17, %23 : vector<16x32xf32>
    %25 = tpu.concatenate %24, %21 in 1 : vector<16x32xf32>, vector<16x32xf32> -> vector<16x64xf32>
    %c0_9 = arith.constant 0 : index
    %c0_10 = arith.constant 0 : index
    %26 = vector.load %arg9[%c0_9, %c0_10] : memref<16x64xf32, #tpu.memory_space<vmem>>, vector<16x64xf32>
    tpu.vector_store %arg9[%c0_9, %c0_10], %25 {strides = array<i32>} : memref<16x64xf32, #tpu.memory_space<vmem>>, vector<16x64xf32>,
    %c0_i32 = arith.constant 0 : i32
    %c3_i32 = arith.constant 3 : i32
    %27 = arith.addi %c0_i32, %c3_i32 : i32
    %c1_i32 = arith.constant 1 : i32
    scf.for %arg10 = %c0_i32 to %27 step %c1_i32  : i32 {
      %28 = arith.index_cast %arg10 : i32 to index
      %c0_12 = arith.constant 0 : index
      %c0_13 = arith.constant 0 : index
      %29 = vector.load %arg1[%28, %c0_12, %c0_13] : memref<3x8x1xi32, #tpu.memory_space<vmem>>, vector<1x8x1xi32>
      %30 = vector.shape_cast %29 : vector<1x8x1xi32> to vector<8x1xi32>
      %31 = arith.index_cast %arg10 : i32 to index
      %c0_14 = arith.constant 0 : index
      %c0_15 = arith.constant 0 : index
      %32 = vector.load %arg2[%31, %c0_14, %c0_15] : memref<3x8x1xi32, #tpu.memory_space<vmem>>, vector<1x8x1xi32>
      %33 = vector.shape_cast %32 : vector<1x8x1xi32> to vector<8x1xi32>
      %34 = arith.index_cast %arg10 : i32 to index
      %c0_16 = arith.constant 0 : index
      %35 = vector.load %arg3[%34, %c0_16] : memref<3x8xi32, #tpu.memory_space<vmem>>, vector<1x8xi32>
      %c0_17 = arith.constant 0 : index
      %c0_18 = arith.constant 0 : index
      %36 = vector.load %arg9[%c0_17, %c0_18] : memref<16x64xf32, #tpu.memory_space<vmem>>, vector<16x64xf32>
      %37 = tpu.iota {dimensions = array<i32: 1>} : vector<8x16xi32>
      %38 = vector.broadcast %30 : vector<8x1xi32> to vector<8x16xi32>
      %39 = arith.cmpi eq, %37, %38 : vector<8x16xi32>
      %40 = arith.extui %39 : vector<8x16xi1> to vector<8x16xi32>
      %41 = arith.sitofp %40 : vector<8x16xi32> to vector<8x16xf32>
      %42 = vector.broadcast %33 : vector<8x1xi32> to vector<8x16xi32>
      %43 = arith.cmpi eq, %37, %42 : vector<8x16xi32>
      %44 = arith.extui %43 : vector<8x16xi1> to vector<8x16xi32>
      %45 = arith.sitofp %44 : vector<8x16xi32> to vector<8x16xf32>
      %cst_19 = arith.constant dense<0.000000e+00> : vector<8x64xf32>
      %46 = tpu.matmul %41, %36, %cst_19 {dimension_numbers = #tpu.dot_dimension_numbers<[1], [0], [0], [1], [0, 0, 1, 1], [], []>} : vector<8x16xf32>, vector<16x64xf32>, vector<8x64xf32> -> vector<8x64xf32>
      %cst_20 = arith.constant dense<0.000000e+00> : vector<8x64xf32>
      %47 = tpu.matmul %45, %36, %cst_20 {dimension_numbers = #tpu.dot_dimension_numbers<[1], [0], [0], [1], [0, 0, 1, 1], [], []>} : vector<8x16xf32>, vector<16x64xf32>, vector<8x64xf32> -> vector<8x64xf32>
      %48 = tpu.concatenate %46, %47 in 1 : vector<8x64xf32>, vector<8x64xf32> -> vector<8x128xf32>
      %c0_21 = arith.constant 0 : index
      %c0_22 = arith.constant 0 : index
      %49 = vector.load %arg7[%c0_21, %c0_22] : memref<128x160xf32, #tpu.memory_space<vmem>>, vector<128x160xf32>
      %cst_23 = arith.constant dense<0.000000e+00> : vector<8x160xf32>
      %50 = tpu.matmul %48, %49, %cst_23 {dimension_numbers = #tpu.dot_dimension_numbers<[1], [0], [0], [1], [0, 0, 1, 1], [], []>} : vector<8x128xf32>, vector<128x160xf32>, vector<8x160xf32> -> vector<8x160xf32>
      %c0_24 = arith.constant 0 : index
      %c0_25 = arith.constant 0 : index
      %51 = vector.load %arg8[%c0_24, %c0_25] : memref<1x160xf32, #tpu.memory_space<vmem>>, vector<1x160xf32>
      %52 = vector.broadcast %51 : vector<1x160xf32> to vector<8x160xf32>
      %53 = arith.addf %50, %52 : vector<8x160xf32>
      %54 = vector.extract_strided_slice %53 {offsets = [0, 0], sizes = [8, 32], strides = [1, 1]} : vector<8x160xf32> to vector<8x32xf32>
      %55 = arith.negf %54 : vector<8x32xf32>
      %56 = math.exp %55 : vector<8x32xf32>
      %cst_26 = arith.constant 1.000000e+00 : f32
      %57 = vector.broadcast %cst_26 : f32 to vector<8x32xf32>
      %58 = arith.addf %57, %56 : vector<8x32xf32>
      %59 = arith.divf %57, %58 : vector<8x32xf32>
      %60 = vector.extract_strided_slice %53 {offsets = [0, 32], sizes = [8, 32], strides = [1, 1]} : vector<8x160xf32> to vector<8x32xf32>
      %61 = arith.negf %60 : vector<8x32xf32>
      %62 = math.exp %61 : vector<8x32xf32>
      %cst_27 = arith.constant 1.000000e+00 : f32
      %63 = vector.broadcast %cst_27 : f32 to vector<8x32xf32>
      %64 = arith.addf %63, %62 : vector<8x32xf32>
      %65 = arith.divf %63, %64 : vector<8x32xf32>
      %66 = vector.extract_strided_slice %53 {offsets = [0, 64], sizes = [8, 32], strides = [1, 1]} : vector<8x160xf32> to vector<8x32xf32>
      %cst_28 = arith.constant 0.000000e+00 : f32
      %67 = vector.broadcast %cst_28 : f32 to vector<8x32xf32>
      %68 = arith.maximumf %66, %67 : vector<8x32xf32>
      %69 = vector.extract_strided_slice %53 {offsets = [0, 96], sizes = [8, 32], strides = [1, 1]} : vector<8x160xf32> to vector<8x32xf32>
      %70 = arith.negf %69 : vector<8x32xf32>
      %71 = math.exp %70 : vector<8x32xf32>
      %cst_29 = arith.constant 1.000000e+00 : f32
      %72 = vector.broadcast %cst_29 : f32 to vector<8x32xf32>
      %73 = arith.addf %72, %71 : vector<8x32xf32>
      %74 = arith.divf %72, %73 : vector<8x32xf32>
      %75 = vector.extract_strided_slice %53 {offsets = [0, 128], sizes = [8, 32], strides = [1, 1]} : vector<8x160xf32> to vector<8x32xf32>
      %76 = arith.negf %75 : vector<8x32xf32>
      %77 = math.exp %76 : vector<8x32xf32>
      %cst_30 = arith.constant 1.000000e+00 : f32
      %78 = vector.broadcast %cst_30 : f32 to vector<8x32xf32>
      %79 = arith.addf %78, %77 : vector<8x32xf32>
      %80 = arith.divf %78, %79 : vector<8x32xf32>
      %81 = vector.extract_strided_slice %48 {offsets = [0, 32], sizes = [8, 32], strides = [1, 1]} : vector<8x128xf32> to vector<8x32xf32>
      %82 = vector.extract_strided_slice %48 {offsets = [0, 96], sizes = [8, 32], strides = [1, 1]} : vector<8x128xf32> to vector<8x32xf32>
      %83 = arith.mulf %59, %68 : vector<8x32xf32>
      %84 = arith.mulf %74, %81 : vector<8x32xf32>
      %85 = arith.addf %83, %84 : vector<8x32xf32>
      %86 = arith.mulf %80, %82 : vector<8x32xf32>
      %87 = arith.addf %85, %86 : vector<8x32xf32>
      %cst_31 = arith.constant 0.000000e+00 : f32
      %88 = vector.broadcast %cst_31 : f32 to vector<8x32xf32>
      %89 = arith.maximumf %87, %88 : vector<8x32xf32>
      %90 = arith.mulf %65, %89 : vector<8x32xf32>
      %91 = tpu.concatenate %90, %87 in 1 : vector<8x32xf32>, vector<8x32xf32> -> vector<8x64xf32>
      %92 = tpu.iota {dimensions = array<i32: 0>} : vector<16x8xi32>
      %93 = vector.broadcast %35 : vector<1x8xi32> to vector<16x8xi32>
      %94 = arith.cmpi eq, %92, %93 : vector<16x8xi32>
      %95 = arith.extui %94 : vector<16x8xi1> to vector<16x8xi32>
      %96 = arith.sitofp %95 : vector<16x8xi32> to vector<16x8xf32>
      %cst_32 = arith.constant dense<0.000000e+00> : vector<16x64xf32>
      %97 = tpu.matmul %96, %91, %cst_32 {dimension_numbers = #tpu.dot_dimension_numbers<[1], [0], [0], [1], [0, 0, 1, 1], [], []>} : vector<16x8xf32>, vector<8x64xf32>, vector<16x64xf32> -> vector<16x64xf32>
      %cst_33 = arith.constant dense<0xFF800000> : vector<16xf32>
      %98 = vector.multi_reduction <maximumf>, %96, %cst_33 [1] : vector<16x8xf32> to vector<16xf32>
      %99 = vector.shape_cast %98 : vector<16xf32> to vector<16x1xf32>
      %cst_34 = arith.constant 0.000000e+00 : f32
      %100 = vector.broadcast %cst_34 : f32 to vector<16x1xf32>
      %101 = arith.cmpf ogt, %99, %100 : vector<16x1xf32>
      %102 = vector.shape_cast %101 : vector<16x1xi1> to vector<16x1xi1>
      %103 = vector.broadcast %102 : vector<16x1xi1> to vector<16x64xi1>
      %104 = arith.select %103, %97, %36 : vector<16x64xi1>, vector<16x64xf32>
      %c0_35 = arith.constant 0 : index
      %c0_36 = arith.constant 0 : index
      %105 = vector.load %arg9[%c0_35, %c0_36] : memref<16x64xf32, #tpu.memory_space<vmem>>, vector<16x64xf32>
      tpu.vector_store %arg9[%c0_35, %c0_36], %104 {strides = array<i32>} : memref<16x64xf32, #tpu.memory_space<vmem>>, vector<16x64xf32>,
    }
    %c3_i32_11 = arith.constant 3 : i32
    return
  }
  func.func @transform_0(%arg0: i32) -> (i32, i32, i32) {
    %c0_i32 = arith.constant 0 : i32
    %c0_i32_0 = arith.constant 0 : i32
    %c0_i32_1 = arith.constant 0 : i32
    %c0_i32_2 = arith.constant 0 : i32
    return %c0_i32, %c0_i32_0, %c0_i32_1 : i32, i32, i32
  }
  func.func @transform_1(%arg0: i32) -> (i32, i32, i32) {
    %c0_i32 = arith.constant 0 : i32
    %c0_i32_0 = arith.constant 0 : i32
    %c0_i32_1 = arith.constant 0 : i32
    %c0_i32_2 = arith.constant 0 : i32
    return %c0_i32, %c0_i32_0, %c0_i32_1 : i32, i32, i32
  }
  func.func @transform_2(%arg0: i32) -> (i32, i32) {
    %c0_i32 = arith.constant 0 : i32
    %c0_i32_0 = arith.constant 0 : i32
    %c0_i32_1 = arith.constant 0 : i32
    return %c0_i32, %c0_i32_0 : i32, i32
  }
  func.func @transform_3(%arg0: i32) -> (i32, i32) {
    %c0_i32 = arith.constant 0 : i32
    %c0_i32_0 = arith.constant 0 : i32
    %c0_i32_1 = arith.constant 0 : i32
    return %c0_i32, %c0_i32_0 : i32, i32
  }
  func.func @transform_4(%arg0: i32) -> (i32, i32) {
    %c0_i32 = arith.constant 0 : i32
    %c0_i32_0 = arith.constant 0 : i32
    %c0_i32_1 = arith.constant 0 : i32
    return %c0_i32, %c0_i32_0 : i32, i32
  }
  func.func @transform_5(%arg0: i32) -> (i32, i32) {
    %c0_i32 = arith.constant 0 : i32
    %c0_i32_0 = arith.constant 0 : i32
    %c0_i32_1 = arith.constant 0 : i32
    return %c0_i32, %c0_i32_0 : i32, i32
  }
  func.func @transform_6(%arg0: i32) -> (i32, i32) {
    %c0_i32 = arith.constant 0 : i32
    %c0_i32_0 = arith.constant 0 : i32
    %c0_i32_1 = arith.constant 0 : i32
    return %c0_i32, %c0_i32_0 : i32, i32
  }
  func.func @transform_7(%arg0: i32) -> (i32, i32) {
    %c0_i32 = arith.constant 0 : i32
    %c0_i32_0 = arith.constant 0 : i32
    %c0_i32_1 = arith.constant 0 : i32
    return %c0_i32, %c0_i32_0 : i32, i32
  }
  func.func @transform_8(%arg0: i32) -> (i32, i32) {
    %c0_i32 = arith.constant 0 : i32
    %c0_i32_0 = arith.constant 0 : i32
    %c0_i32_1 = arith.constant 0 : i32
    return %c0_i32, %c0_i32_0 : i32, i32
  }
}

</mosaic_0001>

<bundles_post_ra>
// kernel: tpu_custom_call.1
= control target key start
LH: loop header
LB: loop body
LE: loop exit
PB: predicated region body
PF: predicated region fallthrough
CT: control target
= control target key end

     0   :  { %13 = vsyncpa [#allocation3], 0  ;;  %vm43_vm0 = vcmask 261120   ;;  %vm179_vm1 = vcmask 523264   ;;  %s926_s19 = smov 0   ;;  %s1081_s0 = inlined_call_operand.vmem [shape: s32[3,8,1], index: 0, kind: input, shape index: {}]   ;;  %s1082_s1 = inlined_call_operand.vmem [shape: s32[3,8,1], index: 1, kind: input, shape index: {}]   ;;  %s1083_s2 = inlined_call_operand.vmem [shape: s32[3,8], index: 2, kind: input, shape index: {}]   ;;  %s1084_s3 = inlined_call_operand.vmem [shape: f32[16,32], index: 3, kind: input, shape index: {}]   ;;  %s1085_s4 = inlined_call_operand.vmem [shape: f32[32,96], index: 4, kind: input, shape index: {}]   ;;  %s1086_s5 = inlined_call_operand.vmem [shape: f32[1,96], index: 5, kind: input, shape index: {}]   ;;  %s1087_s6 = inlined_call_operand.vmem [shape: f32[128,160], index: 6, kind: input, shape index: {}]   ;;  %s1088_s7 = inlined_call_operand.vmem [shape: f32[1,160], index: 7, kind: input, shape index: {}]   ;;  %s1089_s8 = inlined_call_operand.hbm [shape: f32[16,64], index: 8, kind: output, shape index: {}]  }
   0x1   :  { %v32_v0 = vld [vmem:[%s1085_s4] sm:$0xff]  ;;  %v33_v1 = vld [vmem:[%s1085_s4 + $0x8] sm:$0xff]  ;;  %v34_v3 = vld [vmem:[%s1085_s4 + $0x10] sm:$0xff] }
   0x2   :  { %v725_v2 = vpack.c.bf16 %v33_v1, %v32_v0  ;;  %v35_v4 = vld [vmem:[%s1085_s4 + $0x18] sm:$0xff]  ;;  %v30_v5 = vld [vmem:[%s1084_s3] sm:$0xff]  ;;  %v31_v7 = vld [vmem:[%s1084_s3 + $0x8] sm:$0xff]  ;;  %s841_s4 = smov 64   ;;  %s842_s3 = smov 32  }
   0x3   :  { %v729_v6 = vpack.c.bf16 %v35_v4, %v34_v3  ;;  %703 = vmatprep.mubr.msk.f32.mxu0 %vm43_vm0, %v30_v5  ;;  %v663_v8 = vld [vmem:[%s1086_s5] ss:$0 sm:$0xff]  ;;  %s843_s5 = smov 96  }
   0x4   :  { %726 = vmatprep.subr.bf16.mxu0 %v725_v2 }
   0x5   :  { %728 = vmatpush3.bf16.msra.mxu0 %v725_v2 }
   0x6   :  { %730 = vmatprep.subr.bf16.mxu0 %v729_v6 }
   0x9   :  { %732 = vmatpush3.bf16.msra.mxu0 %v729_v6 }
   0xc   :  { %704 = vmatmul.mubr.msk.f32.vlgmr.msra.gmra.mrb[0].mxu0 %vm43_vm0, %v31_v7 }
  0xdf   :  { %v705_v9 = vpop.f32.mrb[0].mxu0 }
  0xe0   :  { %v116_v10 = vpop.f32.mrb[1].mxu0  ;;  %v122_v12 = vadd.f32 %v705_v9, %v663_v8 }
  0xe1   :  { %v117_v11 = vadd.f32 %v663_v8, %v116_v10 }
  0xe2   :  { %v138_v14 = vmax.f32 %v122_v12, 0.0  ;;  %v667_v16 = vmul.f32 -1.442695, %v122_v12 }
  0xe3   :  { %v137_v13 = vmax.f32 %v117_v11, 0.0  ;;  %v666_v15 = vmul.f32 -1.442695, %v117_v11 }
  0xe5   :  { %141 = vrot.lane.b32.xlu0 %v137_v13, %s841_s4  ;;  %792 = vpow2.f32 %v666_v15 }
  0xe6   :  { %794 = vpow2.f32 %v667_v16 }
  0xe9   :  { %143 = vrot.lane.b32.xlu0 %v138_v14, %s841_s4 }
  0xef   :  { %v793_v17 = vpop.eup %792 }
  0xf0   :  { %v131_v18 = vadd.f32 1.0, %v793_v17  ;;  %v795_v19 = vpop.eup %794 }
  0xf1   :  { %v132_v20 = vadd.f32 1.0, %v795_v19 }
  0xf2   :  { %796 = vrcp.f32 %v131_v18 }
  0xf3   :  { %798 = vrcp.f32 %v132_v20 }
  0xfc   :  { %v797_v21 = vpop.eup %796 }
  0xfd   :  { %v799_v25 = vpop.eup %798 }
 0x157   :  { %v142_v22 = vpop.permute.xlu0 %141 }
 0x158   :  { %v147_v23 = vmul.f32 %v797_v21, %v142_v22 }
 0x15a   :  { %v149_v24 = vmax.f32 %v147_v23, 0.0 }
 0x15b   :  { %v144_v26 = vpop.permute.xlu0 %143 }
 0x15c   :  { %v148_v27 = vmul.f32 %v799_v25, %v144_v26  ;;  %153 = vrot.lane.b32.xlu1 %v149_v24, %s842_s3 }
 0x15e   :  { %v150_v28 = vmax.f32 %v148_v27, 0.0 }
 0x160   :  { %155 = vrot.lane.b32.xlu1 %v150_v28, %s842_s3 }
 0x1ce   :  { %v154_v29 = vpop.permute.xlu1 %153 }
 0x1cf   :  { %v159_v30 = vmul.f32 %v797_v21, %v154_v29 }
 0x1d1   :  { %163 = vrot.lane.b32.xlu0 %v159_v30, %s843_s5 }
 0x1d2   :  { %v156_v31 = vpop.permute.xlu1 %155 }
 0x1d3   :  { %v160_v32 = vmul.f32 %v799_v25, %v156_v31 }
 0x1d5   :  { %171 = vrot.lane.b32.xlu0 %v147_v23, %s842_s3  ;;  %165 = vrot.lane.b32.xlu1 %v160_v32, %s843_s5 }
 0x1d9   :  { %173 = vrot.lane.b32.xlu1 %v148_v27, %s842_s3 }
 0x243   :  { %v164_v33 = vpop.permute.xlu0 %163 }
 0x247   :  { %v172_v34 = vpop.permute.xlu0 %171  ;;  %v166_v35 = vpop.permute.xlu1 %165 }
 0x248   :  { %v177_v36 = vsel %vm43_vm0, %v164_v33, %v172_v34 }
 0x249   :  { %180 = vst.msk [vmem:[#allocation2] sm:$0xff] %vm179_vm1, %v177_v36 }
 0x24b   :  { %v174_v37 = vpop.permute.xlu1 %173 }
 0x24c   :  { %v178_v38 = vsel %vm43_vm0, %v166_v35, %v174_v37 }
 0x24d   :  { %181 = vst.msk [vmem:[#allocation2 + $0x8] sm:$0xff] %vm179_vm1, %v178_v38 }
 0x24e LB: > { %v844_v41 = vmov 0   ;;  %v845_v42 = vmov 0.0|0.0   ;;  %s668_s20 = sshll.u32 %s839_s19, 3  ;;  %v846_v44 = vmov 0.0   ;;  %vm847_vm2 = vmmov 0   ;;  %v364_v53 = vld [vmem:[%s1087_s6 + $0x8] sm:$0xff]  ;;  %s193_s25 = scalar_lea.vmem %s1083_s2, %s839_s19  ;;  %s839_s19 = sphi %s926_s19, %s187_s19  }
 0x24f   : > { %800 = vset.pattern.permute.xlu0 %v844_v41  ;;  %733 = vmatprep.subr.bf16.mxu1 %v845_v42  ;;  %s189_s23 = scalar_lea.vmem %s1081_s0, %s668_s20  ;;  %s191_s26 = scalar_lea.vmem %s1082_s1, %s668_s20  ;;  %v197_v47 = vlaneseq  ;;  %vm211_vm3 = vcmask 130048   ;;  %v366_v54 = vld [vmem:[%s1087_s6 + $0x18] sm:$0xff]  ;;  %v363_v55 = vld [vmem:[%s1087_s6] sm:$0xff]  ;;  %v365_v57 = vld [vmem:[%s1087_s6 + $0x10] sm:$0xff]  ;;  %vm539_vm7 = vcmask 64512  }
 0x250   : > { %v931_v39 = vld [vmem:[#allocation2] sm:$0xff]  ;;  %471 = vmatprep.mubr.f32.mxu0 %v846_v44  ;;  %v190_v45 = vld [vmem:[%s189_s23] sm:$0xff]  ;;  %710 = vmatprep.mubr.msk.f32.mxu1 %vm847_vm2, %v846_v44  ;;  %v739_v56 = vpack.c.bf16 %v366_v54, %v364_v53  ;;  %v368_v58 = vld [vmem:[%s1087_s6 + $0x28] sm:$0xff]  ;;  %v741_v60 = vpack.c.bf16 %v365_v57, %v363_v55  ;;  %s848_s5 = smov 64   ;;  %s849_s22 = smov 32  }
 0x251   : > { %200 = vperm.xlu0 %800, %v190_v45   ;;  %v192_v46 = vld [vmem:[%s191_s26] sm:$0xff]  ;;  %v198_v48 = vand.u32 127, %v197_v47  ;;  %v370_v59 = vld [vmem:[%s1087_s6 + $0x38] sm:$0xff]  ;;  %v369_v63 = vld [vmem:[%s1087_s6 + $0x30] sm:$0xff]  ;;  %s850_s26 = smov 96   ;;  %s187_s19 = sadd.s32 1, %s839_s19  }
 0x252   : > { %v743_v61 = vpack.c.bf16 %v370_v59, %v368_v58  ;;  %v367_v62 = vld [vmem:[%s1087_s6 + $0x20] sm:$0xff]  ;;  %v372_v0 = vld [vmem:[%s1087_s6 + $0x48] sm:$0xff]  ;;  %740 = vmatprep.subr.bf16.mxu0 %v739_v56  ;;  %v374_v1 = vld [vmem:[%s1087_s6 + $0x58] sm:$0xff]  ;;  %p184_p0 = scmp.ge.s32.totalorder %s187_s19, 3  }
 0x253   : > { %742 = vmatpush1.bf16.msra.mxu0 %v741_v60  ;;  %v745_v2 = vpack.c.bf16 %v369_v63, %v367_v62  ;;  %v747_v3 = vpack.c.bf16 %v374_v1, %v372_v0  ;;  %v371_v4 = vld [vmem:[%s1087_s6 + $0x40] sm:$0xff]  ;;  %v373_v5 = vld [vmem:[%s1087_s6 + $0x50] sm:$0xff]  ;;  %v376_v6 = vld [vmem:[%s1087_s6 + $0x68] sm:$0xff]  ;;  %s851_s27 = smov (%p184_p0), [#allocation2]  }
 0x254   : > { %v933_v40 = vld [vmem:[#allocation2 + $0x8] sm:$0xff]  ;;  %744 = vmatprep.subr.bf16.mxu0 %v743_v61  ;;  %v378_v7 = vld [vmem:[%s1087_s6 + $0x78] sm:$0xff]  ;;  %v749_v8 = vpack.c.bf16 %v373_v5, %v371_v4  ;;  %v377_v11 = vld [vmem:[%s1087_s6 + $0x70] sm:$0xff]  ;;  %s642_s28 = sshll.u32 (%p184_p0), %s851_s27, 4  ;;  %s643_s28 = int_to_ptr.vmem [resolvable:$true] %s642_s28 }
 0x255   : > { %v734_v43 = vpack.c.bf16 %v933_v40, %v931_v39  ;;  %206 = vperm.xlu0 %800, %v192_v46   ;;  %v751_v9 = vpack.c.bf16 %v378_v7, %v376_v6  ;;  %v375_v10 = vld [vmem:[%s1087_s6 + $0x60] sm:$0xff]  ;;  %v380_v12 = vld [vmem:[%s1087_s6 + $0x88] sm:$0xff]  ;;  %v382_v13 = vld [vmem:[%s1087_s6 + $0x98] sm:$0xff]  ;;  %v398_v46 = vshrl.u32 %v197_v47, 7  ;;  %s809_s29 = scalar_lea.vmem (%p184_p0), %s643_s28, 256  ;;  %p814_p2 = scmp.lt.s32.totalorder (%p184_p0), %s643_s28, %s643_s28 }
 0x256   : > { %v753_v14 = vpack.c.bf16 %v377_v11, %v375_v10  ;;  %v755_v15 = vpack.c.bf16 %v382_v13, %v380_v12  ;;  %v379_v16 = vld [vmem:[%s1087_s6 + $0x80] sm:$0xff]  ;;  %v381_v17 = vld [vmem:[%s1087_s6 + $0x90] sm:$0xff]  ;;  %v384_v18 = vld [vmem:[%s1087_s6 + $0xa8] sm:$0xff]  ;;  %p810_p1 = scmp.ne.s32.totalorder (%p184_p0), %s643_s28, %s809_s29  ;;  %p815_p3 = scmp.lt.s32.totalorder (%p184_p0), %s809_s29, %s809_s29 }
 0x257   : > { %735 = vmatpush3.bf16.msra.mxu1 %v734_v43  ;;  %746 = vmatpush1.bf16.msra.mxu0 %v745_v2  ;;  %v386_v19 = vld [vmem:[%s1087_s6 + $0xb8] sm:$0xff]  ;;  %v757_v20 = vpack.c.bf16 %v381_v17, %v379_v16  ;;  %v383_v22 = vld [vmem:[%s1087_s6 + $0xa0] sm:$0xff]  ;;  %v385_v23 = vld [vmem:[%s1087_s6 + $0xb0] sm:$0xff]  ;;  %v403_v60 = vsub.s32 1, %v398_v46  ;;  %v528_v12 = vadd.s32 8, %v398_v46 }
 0x258   : > { %736 = vmatprep.subr.bf16.mxu1 %v845_v42  ;;  %748 = vmatprep.subr.bf16.mxu0 %v747_v3  ;;  %v759_v21 = vpack.c.bf16 %v386_v19, %v384_v18  ;;  %v388_v24 = vld [vmem:[%s1087_s6 + $0xc8] sm:$0xff]  ;;  %v390_v25 = vld [vmem:[%s1087_s6 + $0xd8] sm:$0xff]  ;;  %v761_v26 = vpack.c.bf16 %v385_v23, %v383_v22  ;;  %v387_v28 = vld [vmem:[%s1087_s6 + $0xc0] sm:$0xff]  ;;  %p816_p4 = por (%p184_p0), %p815_p3, %p814_p2 }
 0x259   : > { %v763_v27 = vpack.c.bf16 %v390_v25, %v388_v24  ;;  %v389_v29 = vld [vmem:[%s1087_s6 + $0xd0] sm:$0xff]  ;;  %v392_v30 = vld [vmem:[%s1087_s6 + $0xe8] sm:$0xff]  ;;  %v394_v31 = vld [vmem:[%s1087_s6 + $0xf8] sm:$0xff] }
 0x25a   : > { %v765_v32 = vpack.c.bf16 %v389_v29, %v387_v28  ;;  %v767_v33 = vpack.c.bf16 %v394_v31, %v392_v30  ;;  %v391_v34 = vld [vmem:[%s1087_s6 + $0xe0] sm:$0xff]  ;;  %v393_v35 = vld [vmem:[%s1087_s6 + $0xf0] sm:$0xff]  ;;  %p817_p5 = pnand (%p184_p0), %p816_p4, %p810_p1 }
 0x25b   : > { %750 = vmatpush1.bf16.msra.mxu0 %v749_v8  ;;  %v769_v36 = vpack.c.bf16 %v393_v35, %v391_v34  ;;  %v675_v11 = vld [vmem:[%s193_s25] ss:$0 sm:$0xff] }
 0x25c   : > { %752 = vmatprep.subr.bf16.mxu0 %v751_v9  ;;  %vm533_vm6 = vcmp.eq.s32.totalorder %v398_v46, %v675_v11  ;;  %vm534_vm8 = vcmp.eq.s32.totalorder %v528_v12, %v675_v11 }
 0x25d   : > { %v676_v13 = vsel %vm533_vm6, 1.0, %v846_v44 }
 0x25e   : > { %v621_v18 = vsel %vm539_vm7, %v676_v13, -inf }
 0x25f   : > { %754 = vmatpush1.bf16.msra.mxu0 %v753_v14  ;;  %v677_v14 = vsel %vm534_vm8, 1.0, %v846_v44 }
 0x260   : > { %756 = vmatprep.subr.bf16.mxu0 %v755_v15  ;;  %v624_v15 = vsel %vm539_vm7, %v677_v14, -inf }
 0x263   : > { %758 = vmatpush1.bf16.msra.mxu0 %v757_v20 }
 0x264   : > { %760 = vmatprep.subr.bf16.mxu0 %v759_v21 }
 0x267   : > { %762 = vmatpush1.bf16.msra.mxu0 %v761_v26 }
 0x268   : > { %764 = vmatprep.subr.bf16.mxu0 %v763_v27 }
 0x26b   : > { %766 = vmatpush1.bf16.msra.mxu0 %v765_v32 }
 0x26c   : > { %768 = vmatprep.subr.bf16.mxu0 %v767_v33 }
 0x26f   : > { %770 = vmatpush1.bf16.msra.mxu0 %v769_v36 }
 0x2d0   : > { %v201_v49 = vpop.permute.xlu0 %200 }
 0x2d1   : > { %vm202_vm4 = vcmp.eq.s32.totalorder %v198_v48, %v201_v49  ;;  %v395_v49 = vld [vmem:[%s1088_s7] sm:$0x3] }
 0x2d2   : > { %v669_v50 = vsel %vm202_vm4, 1.0, %v846_v44  ;;  %v404_v61 = vrot.slane %v395_v49, %v403_v60 }
 0x2d3   : > { %711 = vmatmul.mubr.msk.f32.vlgmr.msra.gmra.mrb[0].mxu1 %vm211_vm3, %v669_v50 }
 0x2d4   : > { %738 = vmatpush3.bf16.msra.mxu1 %v734_v43  ;;  %v207_v51 = vpop.permute.xlu0 %206  ;;  %717 = vmatprep.mubr.msk.f32.mxu1 %vm847_vm2, %v846_v44 }
 0x2d5   : > { %vm208_vm5 = vcmp.eq.s32.totalorder %v198_v48, %v207_v51  ;;  %v399_v48 = vsub.s32 0, %v398_v46 }
 0x2d6   : > { %v670_v52 = vsel %vm208_vm5, 1.0, %v846_v44 }
 0x2d7   : > { %718 = vmatmul.mubr.msk.f32.vlgmr.msra.gmra.mrb[2].mxu1 %vm211_vm3, %v670_v52  ;;  %v400_v50 = vrot.slane %v395_v49, %v399_v48 }
 0x2d8   : > { %722 = vmatprep.mubr.msk.f32.mxu1 %vm539_vm7, %v676_v13 }
 0x3a6   : > { %v281_v37 = vpop.f32.mrb[0].mxu1 }
 0x3a7   : > { %v712_v38 = vpop.f32.mrb[1].mxu1 }
 0x3aa   : > { %v354_v41 = vpop.f32.mrb[2].mxu1 }
 0x3ab   : > { %359 = vrot.lane.b32.xlu1 %v354_v41, %s848_s5  ;;  %v719_v42 = vpop.f32.mrb[3].mxu1 }
 0x41d   : > { %v360_v43 = vpop.permute.xlu1 %359 }
 0x41e   : > { %v362_v45 = vsel %vm179_vm1, %v281_v37, %v360_v43 }
 0x41f   : > { %497 = vrot.lane.b32.xlu1 %v362_v45, %s848_s5  ;;  %472 = vmatmul.mubr.f32.vlgmr.msra.gmra.mrb[0].mxu0 %v362_v45 }
 0x491   : > { %v498_v47 = vpop.permute.xlu1 %497 }
 0x4f2   : > { %v473_v51 = vpop.f32.mrb[0].mxu0 }
 0x4f3   : > { %v474_v52 = vadd.f32 %v473_v51, %v400_v50  ;;  %v475_v53 = vpop.f32.mrb[1].mxu0 }
 0x4f4   : > { %v476_v62 = vadd.f32 %v475_v53, %v404_v61 }
 0x4f5   : > { %v673_v54 = vmul.f32 -1.442695, %v474_v52  ;;  %v484_v55 = vmax.f32 %v474_v52, 0.0 }
 0x4f6   : > { %v674_v63 = vmul.f32 -1.442695, %v476_v62 }
 0x4f7   : > { %801 = vpow2.f32 %v673_v54  ;;  %492 = vrot.lane.b32.xlu0 %v484_v55, %s848_s5 }
 0x4fb   : > { %506 = vrot.lane.b32.xlu0 %v362_v45, %s849_s22 }
 0x501   : > { %v802_v56 = vpop.eup %801 }
 0x502   : > { %v481_v57 = vadd.f32 1.0, %v802_v56 }
 0x504   : > { %803 = vrcp.f32 %v481_v57 }
 0x505   : > { %805 = vpow2.f32 %v674_v63 }
 0x50e   : > { %v804_v58 = vpop.eup %803 }
 0x50f   : > { %v500_v59 = vmul.f32 %v804_v58, %v498_v47  ;;  %v806_v0 = vpop.eup %805 }
 0x510   : > { %v488_v1 = vadd.f32 1.0, %v806_v0 }
 0x511   : > { %502 = vrot.lane.b32.xlu1 %v500_v59, %s849_s22 }
 0x512   : > { %807 = vrcp.f32 %v488_v1 }
 0x51c   : > { %v808_v5 = vpop.eup %807 }
 0x569   : > { %v493_v2 = vpop.permute.xlu0 %492 }
 0x56a   : > { %v495_v4 = vmul.f32 %v804_v58, %v493_v2 }
 0x56d   : > { %v507_v3 = vpop.permute.xlu0 %506 }
 0x56e   : > { %v509_v7 = vmul.f32 %v808_v5, %v507_v3 }
 0x583   : > { %v503_v6 = vpop.permute.xlu1 %502 }
 0x584   : > { %v505_v8 = vadd.f32 %v503_v6, %v495_v4 }
 0x586   : > { %v510_v9 = vadd.f32 %v509_v7, %v505_v8 }
 0x588   : > { %v511_v10 = vmax.f32 %v510_v9, 0.0 }
 0x58a   : > { %513 = vrot.lane.b32.xlu1 %v511_v10, %s849_s22 }
 0x58e   : > { %522 = vrot.lane.b32.xlu1 %v510_v9, %s849_s22 }
 0x5b2   : > { %625 = vmax.xlane.f32.xlu1 %v624_v15 }
 0x5fc   : > { %v514_v16 = vpop.permute.xlu1 %513 }
 0x5fd   : > { %v516_v17 = vmul.f32 %v804_v58, %v514_v16 }
 0x5ff   : > { %518 = vrot.lane.b32.xlu0 %v516_v17, %s850_s26 }
 0x600   : > { %v523_v19 = vpop.permute.xlu1 %522 }
 0x61e   : > { %622 = vmax.xlane.f32.xlu0 %v621_v18 }
 0x63f   : > { %v626_v22 = vpop.xlane.xlu1 %625 }
 0x640   : > { %vm628_vm9 = vcmp.gt.f32.partialorder %v626_v22, 0.0 }
 0x671   : > { %v519_v20 = vpop.permute.xlu0 %518 }
 0x672   : > { %v525_v21 = vsel %vm43_vm0, %v519_v20, %v523_v19 }
 0x673   : > { %720 = vmatprep.subr.mxu1 %v525_v21 }
 0x674   : > { %721 = vmatpush3.msra.mxu1 %v525_v21 }
 0x675   : > { %723 = vmatmul.mubr.msk.f32.vlgmr.msra.gmra.mrb[4].mxu1 %vm539_vm7, %v677_v14 }
 0x6ab   : > { %v623_v44 = vpop.xlane.xlu0 %622 }
 0x6ac   : > { %vm627_vm10 = vcmp.gt.f32.partialorder %v623_v44, 0.0 }
 0x745   :  { %186 = sbr.rel (!%p184_p0) target bundleno = 590 (0x24e), region = 62 }
 0x748   : > { %v724_v23 = vpop.f32.mrb[4].mxu1 }
 0x749   : > { %v634_v24 = vsel %vm628_vm9, %v724_v23, %v933_v40  ;;  %v612_v25 = vpop.f32.mrb[5].mxu1 }
 0x74a   : > { %636 = vst.msk [vmem:[#allocation2 + $0x8] sm:$0xff] %vm179_vm1, %v634_v24  ;;  %v633_v26 = vsel %vm627_vm10, %v612_v25, %v931_v39 }
 0x74b   : > { %635 = vst.msk [vmem:[#allocation2] sm:$0xff] %vm179_vm1, %v633_v26 }
 0x74c   :  { %820 = shalt.err (!%p817_p5)
}
 0x74d   :  { %s821_s10 = scalar_lea.hbm %s1089_s8, 256 }
 0x74e   :  { %p822_p6 = scmp.ne.s32.totalorder %s1089_s8, %s821_s10  ;;  %p825_p7 = scmp.lt.u32.totalorder %s821_s10, %s1089_s8 }
 0x750   :  { %p827_p8 = pnand %p825_p7, %p822_p6 }
 0x752   :  { %830 = shalt.err (!%p827_p8)
}
 0x753   :  { %s852_s0 = smov 128   ;;  %s853_s1 = smov 8  }
 0x754   :  { %648 = dma.vmem_to_hbm [thread:$0]  %s643_s28, 256, %s1089_s8, [#allocation3], %s852_s0, %s852_s0, %s853_s1  }
 0x755   :  { %835 = dma.done.wait [#allocation3], 256  }
 0x756   :  { %836 = vsyncadd [#allocation3], 4294967040 }
 0x757   :  { %652 = vsyncpa [#allocation3], 1 }

</bundles_post_ra>
